<compile_context>
chip_gen: v6e
topology: v6e:2x2x1
jax: 0.10.0
libtpu: 0.0.40
codegen_flags: <defaults>
</compile_context>

<pallas_src>
import functools
import math
from typing import NamedTuple

import jax
import jax.numpy as jnp
from jax.experimental import pallas as pl
from jax.experimental.pallas import tpu as pltpu


_MIB = 1024 * 1024
_MAX_BLOCK_BYTES = 4 * _MIB      # per-input HBM block cap (fits 2x2 buffers + scratch on v7x)
_MAX_CHUNK_ELEMS = 16384         # cap on elements touched per inner compute step


def _round_up(v, m):
    return -(-v // m) * m


def _largest_divisor_le(n, cap):
    cap = max(1, min(n, cap))
    for d in range(cap, 0, -1):
        if n % d == 0:
            return d
    return 1


def _pick_batch_tile(batch, cap, per_item_bytes):
    """Largest divisor of `batch` <= cap; prefer leaving >= 2 outer blocks
    (keeps both v7x TensorCores busy) unless that shrinks blocks below ~1 MiB."""
    d = _largest_divisor_le(batch, cap)
    if batch >= 2 and batch // d < 2:
        alt = _largest_divisor_le(batch, batch // 2)
        if alt * per_item_bytes >= 1 * _MIB:
            d = alt
    return d


class _Plan(NamedTuple):
    b_tile: int
    tile: int
    num_s: int
    lchunk: int
    n_lc: int
    need_mask: bool
    n_split: int
    num_inner: int
    num_outer: int
    vmem_limit: int


def _plan(batch, chans, hw, itemsize):
    per_batch_bytes = chans * hw * itemsize

    batch_block = (hw < 128) or (per_batch_bytes <= _MAX_BLOCK_BYTES
                                 and chans * hw <= _MAX_CHUNK_ELEMS)
    if batch_block:
        # Whole (C, HW) of one or more batch items per block; grow along batch.
        tile, num_s, need_mask = hw, 1, False
        lchunk, n_lc = hw, 1
        cap = max(1, _MAX_BLOCK_BYTES // max(1, per_batch_bytes))
        b_tile = _pick_batch_tile(batch, cap, per_batch_bytes)
    else:
        # Tile the spatial axis (hw >= 128 here) in multiples of 128 lanes.
        budget = max(128, (_MAX_BLOCK_BYTES // (chans * itemsize)) // 128 * 128)
        tile = min((hw // 128) * 128, budget)
        num_s = -(-hw // tile)
        need_mask = (hw % tile) != 0
        # Inner compute chunk: ~8K elements per step to bound vreg live ranges.
        desired = max(128, min(4096,
                               (_MAX_CHUNK_ELEMS // 2 // max(chans, 1)) // 128 * 128))
        lchunk = 128
        for cand in range(desired, 127, -128):
            if tile % cand == 0:
                lchunk = cand
                break
        n_lc = tile // lchunk
        if num_s == 1:
            blk_bytes = chans * tile * itemsize
            cap = max(1, _MAX_BLOCK_BYTES // max(1, blk_bytes))
            b_tile = _pick_batch_tile(batch, cap, blk_bytes)
        else:
            b_tile = 1

    num_b_blocks = batch // b_tile
    # If there is only one outer block, split spatial steps in two "parallel"
    # chunks so both v7x TensorCores get work (harmless on single-TC chips).
    if num_b_blocks == 1 and num_s >= 4 and num_s % 2 == 0:
        n_split = 2
    else:
        n_split = 1
    num_inner = num_s // n_split
    num_outer = num_b_blocks * n_split

    sublane = max(8, 32 // itemsize)
    blk_bytes = b_tile * _round_up(chans, sublane) * _round_up(tile, 128) * itemsize
    est = 2 * 2 * blk_bytes                       # 2 inputs x double buffer
    est += 2 * 8 * _round_up(lchunk, 128) * 4     # accumulators
    est += 2 * 8 * 128 * 4                        # output block (double buffer)
    vmem_limit = int(max(32 * _MIB, min(est * 3 // 2, 112 * _MIB)))

    return _Plan(b_tile, tile, num_s, lchunk, n_lc, need_mask,
                 n_split, num_inner, num_outer, vmem_limit)


def _mse_cosine_kernel(x_ref, y_ref, out_ref, acc_se, acc_cos, *,
                       hw, tile, lchunk, n_bt, n_lc, need_mask,
                       n_split, num_inner):
    # x_ref / y_ref: (B_TILE, C, TILE) block.  out_ref: (8, 128) per outer block.
    si = pl.program_id(1)

    @pl.when(si == 0)
    def _():
        acc_se[...] = jnp.zeros_like(acc_se)
        acc_cos[...] = jnp.zeros_like(acc_cos)

    if need_mask:
        if n_split > 1:
            s_block = (pl.program_id(0) % n_split) * num_inner + si
        else:
            s_block = si
        block_start = s_block * tile
    else:
        block_start = 0  # unused

    eps2 = jnp.float32(1e-16)

    def process(b, start):
        xs = x_ref[pl.ds(b, 1), :, pl.ds(start, lchunk)].astype(jnp.float32)
        ys = y_ref[pl.ds(b, 1), :, pl.ds(start, lchunk)].astype(jnp.float32)
        if need_mask:
            lane = jax.lax.broadcasted_iota(jnp.int32, (1, 1, lchunk), 2)
            valid = (block_start + start + lane) < hw
            xs = jnp.where(valid, xs, 0.0)
            ys = jnp.where(valid, ys, 0.0)
        d = xs - ys
        se = jnp.sum(d * d, axis=1)          # (1, lchunk) squared error per lane
        sxy = jnp.sum(xs * ys, axis=1)
        sx = jnp.sum(xs * xs, axis=1)
        sy = jnp.sum(ys * ys, axis=1)
        # cosine over channels: dot / max(||x||*||y||, 1e-8); masked lanes -> 0.
        cos = sxy * jax.lax.rsqrt(jnp.maximum(sx * sy, eps2))
        acc_se[...] += se
        acc_cos[...] += cos

    total = n_bt * n_lc
    if total == 1:
        process(0, 0)
    else:
        @pl.loop(0, total)
        def _(t):
            if n_lc == 1:
                b, start = t, 0
            elif n_bt == 1:
                b = 0
                start = pl.multiple_of(t * lchunk, lchunk)
            else:
                b = t // n_lc
                start = pl.multiple_of((t % n_lc) * lchunk, lchunk)
            process(b, start)

    @pl.when(si == pl.num_programs(1) - 1)
    def _():
        sse = jnp.sum(acc_se[...])           # sum of squared errors, this block
        sco = jnp.sum(acc_cos[...])          # sum of cosine sims, this block
        sub = jax.lax.broadcasted_iota(jnp.int32, out_ref.shape, 0)
        lane = jax.lax.broadcasted_iota(jnp.int32, out_ref.shape, 1)
        vals = jnp.where((sub == 0) & (lane == 0), sse, jnp.float32(0.0))
        vals = jnp.where((sub == 0) & (lane == 1), sco, vals)
        out_ref[...] = vals


def mse_cosine_loss(x, y, mse_weight: float = 1.0):
    """Pallas implementation of MSECosineLoss.forward(input, target) (NCHW)."""
    assert x.shape == y.shape, "input and target must have the same shape"
    assert x.ndim >= 2, "expected at least (N, C, ...) input"
    batch, chans = int(x.shape[0]), int(x.shape[1])
    hw = int(math.prod(x.shape[2:])) if x.ndim > 2 else 1
    itemsize = jnp.dtype(x.dtype).itemsize

    p = _plan(batch, chans, hw, itemsize)

    x3 = x.reshape(batch, chans, hw)
    y3 = y.reshape(batch, chans, hw)

    if p.n_split == 1:
        in_idx = lambda o, si: (o, 0, si)
    else:
        ns, ni = p.n_split, p.num_inner
        in_idx = lambda o, si: (o // ns, 0, (o % ns) * ni + si)
    in_spec = pl.BlockSpec((p.b_tile, chans, p.tile), in_idx)
    out_spec = pl.BlockSpec((None, 8, 128), lambda o, si: (o, 0, 0))

    kernel = functools.partial(
        _mse_cosine_kernel,
        hw=hw, tile=p.tile, lchunk=p.lchunk, n_bt=p.b_tile, n_lc=p.n_lc,
        need_mask=p.need_mask, n_split=p.n_split, num_inner=p.num_inner)

    parts = pl.pallas_call(
        kernel,
        out_shape=jax.ShapeDtypeStruct((p.num_outer, 8, 128), jnp.float32),
        grid_spec=pltpu.PrefetchScalarGridSpec(
            num_scalar_prefetch=0,
            grid=(p.num_outer, p.num_inner),
            in_specs=[in_spec, in_spec],
            out_specs=out_spec,
            scratch_shapes=[pltpu.VMEM((1, p.lchunk), jnp.float32),
                            pltpu.VMEM((1, p.lchunk), jnp.float32)]),
        compiler_params=pltpu.CompilerParams(
            dimension_semantics=("parallel", "arbitrary"),
            vmem_limit_bytes=p.vmem_limit),
    )(x3, y3)

    sum_sq_err = jnp.sum(parts[:, 0, 0])
    sum_cos = jnp.sum(parts[:, 0, 1])
    mse = sum_sq_err / jnp.float32(batch * chans * hw)
    cosine_loss = jnp.float32(1.0) - sum_cos / jnp.float32(batch * hw)
    return jnp.float32(mse_weight) * mse + cosine_loss


def _reference_loss(x, y, mse_weight: float = 1.0):
    """Plain-JAX reference mirroring the PyTorch module's forward."""
    xf = x.astype(jnp.float32)
    yf = y.astype(jnp.float32)
    mse = jnp.mean((xf - yf) ** 2)
    dot = jnp.sum(xf * yf, axis=1)
    nx = jnp.sqrt(jnp.sum(xf * xf, axis=1))
    ny = jnp.sqrt(jnp.sum(yf * yf, axis=1))
    cos = dot / jnp.maximum(nx * ny, 1e-8)
    return mse_weight * mse + (1.0 - jnp.mean(cos))


if __name__ == "__main__":
    key = jax.random.PRNGKey(0)
    cases = [
        ((2, 4, 16, 16), jnp.float32, 1.0),    # batch-grown block, dynamic batch loop
        ((2, 16, 8, 20), jnp.float32, 0.5),    # HW not a multiple of 128, full-dim block
        ((2, 4, 64, 128), jnp.bfloat16, 1.0),  # bf16, lane-chunked inner loop
        ((1, 8, 48, 100), jnp.float32, 1.0),   # spatial tiling + masked ragged tail
    ]
    for shape, dtype, w in cases:
        key, k1, k2 = jax.random.split(key, 3)
        x = jax.random.normal(k1, shape, dtype=jnp.float32).astype(dtype)
        y = jax.random.normal(k2, shape, dtype=jnp.float32).astype(dtype)

        loss = jax.block_until_ready(mse_cosine_loss(x, y, mse_weight=w))
        ref = jax.block_until_ready(_reference_loss(x, y, mse_weight=w))

        tol = 1e-4 if dtype == jnp.float32 else 1e-3
        assert jnp.allclose(loss, ref, rtol=tol, atol=tol), (shape, loss, ref)

    print("KERNEL_OK")
</pallas_src>

<mosaic_0001>
module attributes {stable_mosaic.version = 11 : i64} {
  func.func @_mse_cosine_kernel(%arg0: i32, %arg1: i32, %arg2: memref<2x4x256xf32, #tpu.memory_space<vmem>>, %arg3: memref<2x4x256xf32, #tpu.memory_space<vmem>>, %arg4: memref<1x8x128xf32, #tpu.memory_space<vmem>>, %arg5: memref<1x256xf32, #tpu.memory_space<vmem>>, %arg6: memref<1x256xf32, #tpu.memory_space<vmem>>) attributes {dimension_semantics = [#tpu.dimension_semantics<parallel>, #tpu.dimension_semantics<arbitrary>], iteration_bounds = array<i64: 1, 1>, scalar_prefetch = 0 : i64, scratch_operands = 2 : i64, tpu.core_type = #tpu.core_type<tc>, window_params = [{transform_indices = @transform_0, window_bounds = array<i64: 2, 4, 256>}, {transform_indices = @transform_1, window_bounds = array<i64: 2, 4, 256>}, {transform_indices = @transform_2, window_bounds = array<i64: 1, 8, 128>}]} {
    %c0_i32 = arith.constant 0 : i32
    %0 = arith.cmpi eq, %arg1, %c0_i32 : i32
    %1 = arith.extui %0 : i1 to i32
    %c0_i32_0 = arith.constant 0 : i32
    %2 = arith.cmpi ne, %1, %c0_i32_0 : i32
    scf.if %2 {
      %cst_5 = arith.constant 0.000000e+00 : f32
      %7 = vector.broadcast %cst_5 : f32 to vector<1x256xf32>
      %c0 = arith.constant 0 : index
      %c0_6 = arith.constant 0 : index
      %8 = vector.load %arg5[%c0, %c0_6] : memref<1x256xf32, #tpu.memory_space<vmem>>, vector<1x256xf32>
      tpu.vector_store %arg5[%c0, %c0_6], %7 {strides = array<i32>} : memref<1x256xf32, #tpu.memory_space<vmem>>, vector<1x256xf32>,
      %cst_7 = arith.constant 0.000000e+00 : f32
      %9 = vector.broadcast %cst_7 : f32 to vector<1x256xf32>
      %c0_8 = arith.constant 0 : index
      %c0_9 = arith.constant 0 : index
      %10 = vector.load %arg6[%c0_8, %c0_9] : memref<1x256xf32, #tpu.memory_space<vmem>>, vector<1x256xf32>
      tpu.vector_store %arg6[%c0_8, %c0_9], %9 {strides = array<i32>} : memref<1x256xf32, #tpu.memory_space<vmem>>, vector<1x256xf32>,
    } else {
    }
    %cst = arith.constant 1.000000e-16 : f32
    %c0_i32_1 = arith.constant 0 : i32
    %c2_i32 = arith.constant 2 : i32
    %3 = arith.addi %c0_i32_1, %c2_i32 : i32
    %c1_i32 = arith.constant 1 : i32
    scf.for %arg7 = %c0_i32_1 to %3 step %c1_i32  : i32 {
      %c1_i32_5 = arith.constant 1 : i32
      %7 = arith.muli %arg7, %c1_i32_5 : i32
      %c0_i32_6 = arith.constant 0 : i32
      %8 = arith.addi %c0_i32_6, %7 : i32
      %9 = arith.index_cast %8 : i32 to index
      %c0 = arith.constant 0 : index
      %c0_7 = arith.constant 0 : index
      %10 = vector.load %arg2[%9, %c0, %c0_7] : memref<2x4x256xf32, #tpu.memory_space<vmem>>, vector<1x4x256xf32>
      %11 = arith.index_cast %8 : i32 to index
      %c0_8 = arith.constant 0 : index
      %c0_9 = arith.constant 0 : index
      %12 = vector.load %arg3[%11, %c0_8, %c0_9] : memref<2x4x256xf32, #tpu.memory_space<vmem>>, vector<1x4x256xf32>
      %13 = arith.subf %10, %12 : vector<1x4x256xf32>
      %14 = arith.mulf %13, %13 : vector<1x4x256xf32>
      %cst_10 = arith.constant dense<0.000000e+00> : vector<1x256xf32>
      %15 = vector.multi_reduction <add>, %14, %cst_10 [1] : vector<1x4x256xf32> to vector<1x256xf32>
      %16 = arith.mulf %10, %12 : vector<1x4x256xf32>
      %cst_11 = arith.constant dense<0.000000e+00> : vector<1x256xf32>
      %17 = vector.multi_reduction <add>, %16, %cst_11 [1] : vector<1x4x256xf32> to vector<1x256xf32>
      %18 = arith.mulf %10, %10 : vector<1x4x256xf32>
      %cst_12 = arith.constant dense<0.000000e+00> : vector<1x256xf32>
      %19 = vector.multi_reduction <add>, %18, %cst_12 [1] : vector<1x4x256xf32> to vector<1x256xf32>
      %20 = arith.mulf %12, %12 : vector<1x4x256xf32>
      %cst_13 = arith.constant dense<0.000000e+00> : vector<1x256xf32>
      %21 = vector.multi_reduction <add>, %20, %cst_13 [1] : vector<1x4x256xf32> to vector<1x256xf32>
      %22 = arith.mulf %19, %21 : vector<1x256xf32>
      %23 = vector.broadcast %cst : f32 to vector<1x256xf32>
      %24 = arith.maximumf %22, %23 : vector<1x256xf32>
      %25 = math.rsqrt %24 : vector<1x256xf32>
      %26 = arith.mulf %17, %25 : vector<1x256xf32>
      %c0_14 = arith.constant 0 : index
      %c0_15 = arith.constant 0 : index
      %27 = vector.load %arg5[%c0_14, %c0_15] : memref<1x256xf32, #tpu.memory_space<vmem>>, vector<1x256xf32>
      %28 = arith.addf %27, %15 : vector<1x256xf32>
      %c0_16 = arith.constant 0 : index
      %c0_17 = arith.constant 0 : index
      %29 = vector.load %arg5[%c0_16, %c0_17] : memref<1x256xf32, #tpu.memory_space<vmem>>, vector<1x256xf32>
      tpu.vector_store %arg5[%c0_16, %c0_17], %28 {strides = array<i32>} : memref<1x256xf32, #tpu.memory_space<vmem>>, vector<1x256xf32>,
      %c0_18 = arith.constant 0 : index
      %c0_19 = arith.constant 0 : index
      %30 = vector.load %arg6[%c0_18, %c0_19] : memref<1x256xf32, #tpu.memory_space<vmem>>, vector<1x256xf32>
      %31 = arith.addf %30, %26 : vector<1x256xf32>
      %c0_20 = arith.constant 0 : index
      %c0_21 = arith.constant 0 : index
      %32 = vector.load %arg6[%c0_20, %c0_21] : memref<1x256xf32, #tpu.memory_space<vmem>>, vector<1x256xf32>
      tpu.vector_store %arg6[%c0_20, %c0_21], %31 {strides = array<i32>} : memref<1x256xf32, #tpu.memory_space<vmem>>, vector<1x256xf32>,
    }
    %c2_i32_2 = arith.constant 2 : i32
    %c0_i32_3 = arith.constant 0 : i32
    %4 = arith.cmpi eq, %arg1, %c0_i32_3 : i32
    %5 = arith.extui %4 : i1 to i32
    %c0_i32_4 = arith.constant 0 : i32
    %6 = arith.cmpi ne, %5, %c0_i32_4 : i32
    scf.if %6 {
      %c0 = arith.constant 0 : index
      %c0_5 = arith.constant 0 : index
      %7 = vector.load %arg5[%c0, %c0_5] : memref<1x256xf32, #tpu.memory_space<vmem>>, vector<1x256xf32>
      %8 = vector.shape_cast %7 : vector<1x256xf32> to vector<1x1x256xf32>
      %cst_6 = arith.constant dense<0.000000e+00> : vector<1xf32>
      %9 = vector.multi_reduction <add>, %8, %cst_6 [1, 2] : vector<1x1x256xf32> to vector<1xf32>
      %10 = vector.shape_cast %9 : vector<1xf32> to vector<1x1x1xf32>
      %11 = vector.extract %10[0, 0, 0] : f32 from vector<1x1x1xf32>
      %c0_7 = arith.constant 0 : index
      %c0_8 = arith.constant 0 : index
      %12 = vector.load %arg6[%c0_7, %c0_8] : memref<1x256xf32, #tpu.memory_space<vmem>>, vector<1x256xf32>
      %13 = vector.shape_cast %12 : vector<1x256xf32> to vector<1x1x256xf32>
      %cst_9 = arith.constant dense<0.000000e+00> : vector<1xf32>
      %14 = vector.multi_reduction <add>, %13, %cst_9 [1, 2] : vector<1x1x256xf32> to vector<1xf32>
      %15 = vector.shape_cast %14 : vector<1xf32> to vector<1x1x1xf32>
      %16 = vector.extract %15[0, 0, 0] : f32 from vector<1x1x1xf32>
      %17 = tpu.iota {dimensions = array<i32: 0>} : vector<8x128xi32>
      %18 = tpu.iota {dimensions = array<i32: 1>} : vector<8x128xi32>
      %c0_i32_10 = arith.constant 0 : i32
      %19 = vector.broadcast %c0_i32_10 : i32 to vector<8x128xi32>
      %20 = arith.cmpi eq, %17, %19 : vector<8x128xi32>
      %c0_i32_11 = arith.constant 0 : i32
      %21 = vector.broadcast %c0_i32_11 : i32 to vector<8x128xi32>
      %22 = arith.cmpi eq, %18, %21 : vector<8x128xi32>
      %23 = arith.andi %20, %22 : vector<8x128xi1>
      %cst_12 = arith.constant 0.000000e+00 : f32
      %24 = vector.broadcast %11 : f32 to vector<8x128xf32>
      %25 = vector.broadcast %cst_12 : f32 to vector<8x128xf32>
      %26 = arith.select %23, %24, %25 : vector<8x128xi1>, vector<8x128xf32>
      %c0_i32_13 = arith.constant 0 : i32
      %27 = vector.broadcast %c0_i32_13 : i32 to vector<8x128xi32>
      %28 = arith.cmpi eq, %17, %27 : vector<8x128xi32>
      %c1_i32_14 = arith.constant 1 : i32
      %29 = vector.broadcast %c1_i32_14 : i32 to vector<8x128xi32>
      %30 = arith.cmpi eq, %18, %29 : vector<8x128xi32>
      %31 = arith.andi %28, %30 : vector<8x128xi1>
      %32 = vector.broadcast %16 : f32 to vector<8x128xf32>
      %33 = arith.select %31, %32, %26 : vector<8x128xi1>, vector<8x128xf32>
      %c0_15 = arith.constant 0 : index
      %c0_16 = arith.constant 0 : index
      %c0_17 = arith.constant 0 : index
      %34 = vector.load %arg4[%c0_15, %c0_16, %c0_17] : memref<1x8x128xf32, #tpu.memory_space<vmem>>, vector<1x8x128xf32>
      %35 = vector.shape_cast %34 : vector<1x8x128xf32> to vector<8x128xf32>
      %36 = vector.shape_cast %33 : vector<8x128xf32> to vector<1x8x128xf32>
      tpu.vector_store %arg4[%c0_15, %c0_16, %c0_17], %36 {strides = array<i32>} : memref<1x8x128xf32, #tpu.memory_space<vmem>>, vector<1x8x128xf32>,
    } else {
    }
    return
  }
  func.func @transform_0(%arg0: i32, %arg1: i32) -> (i32, i32, i32) {
    %c0_i32 = arith.constant 0 : i32
    %c0_i32_0 = arith.constant 0 : i32
    return %arg0, %c0_i32, %arg1 : i32, i32, i32
  }
  func.func @transform_1(%arg0: i32, %arg1: i32) -> (i32, i32, i32) {
    %c0_i32 = arith.constant 0 : i32
    %c0_i32_0 = arith.constant 0 : i32
    return %arg0, %c0_i32, %arg1 : i32, i32, i32
  }
  func.func @transform_2(%arg0: i32, %arg1: i32) -> (i32, i32, i32) {
    %c0_i32 = arith.constant 0 : i32
    %c0_i32_0 = arith.constant 0 : i32
    %c0_i32_1 = arith.constant 0 : i32
    return %arg0, %c0_i32, %c0_i32_0 : i32, i32, i32
  }
}

</mosaic_0001>

<bundles_post_ra>
// kernel: tpu_custom_call.1
= control target key start
LH: loop header
LB: loop body
LE: loop exit
PB: predicated region body
PF: predicated region fallthrough
CT: control target
= control target key end

     0   :  { %7 = vsyncpa [#allocation5], 0  ;;  %s453_s0 = inlined_call_operand.hbm [shape: f32[2,4,256], index: 0, kind: input, shape index: {}]   ;;  %s454_s1 = inlined_call_operand.hbm [shape: f32[2,4,256], index: 1, kind: input, shape index: {}]   ;;  %s455_s2 = inlined_call_operand.hbm [shape: f32[1,8,128], index: 2, kind: output, shape index: {}]  }
   0x1   :  { %8 = vsyncpa [#allocation8], 0 }
   0x2   :  { %9 = vsyncpa [#allocation6], 0  ;;  %s384_s9 = smov [#allocation4]  }
   0x3   :  { %s15_s10 = sshll.u32 %s384_s9, 4  ;;  %s16_s10 = int_to_ptr.vmem [resolvable:$true] %s15_s10 }
   0x4   :  { %s318_s11 = scalar_lea.vmem %s16_s10, 256  ;;  %p323_p1 = scmp.lt.s32.totalorder %s16_s10, %s16_s10 }
   0x5   :  { %p319_p0 = scmp.ne.s32.totalorder %s16_s10, %s318_s11  ;;  %p324_p2 = scmp.lt.s32.totalorder %s318_s11, %s318_s11 }
   0x7   :  { %p325_p3 = por %p324_p2, %p323_p1 }
   0x9   :  { %p326_p4 = pnand %p325_p3, %p319_p0 }
   0xb   :  { %329 = shalt.err (!%p326_p4)
}
   0xc   :  { %s385_s12 = smov 128   ;;  %s386_s13 = smov 8  }
   0xd   :  { %21 = dma.hbm_to_vmem [thread:$0]  %s453_s0, 256, %s16_s10, [#allocation5], %s385_s12, %s385_s12, %s386_s13  }
   0xe   :  { %s387_s16 = smov [#allocation7]  }
   0xf   :  { %s27_s17 = sshll.u32 %s387_s16, 4  ;;  %s28_s17 = int_to_ptr.vmem [resolvable:$true] %s27_s17 }
  0x10   :  { %s338_s18 = scalar_lea.vmem %s28_s17, 256  ;;  %p343_p6 = scmp.lt.s32.totalorder %s28_s17, %s28_s17 }
  0x11   :  { %p339_p5 = scmp.ne.s32.totalorder %s28_s17, %s338_s18  ;;  %p344_p7 = scmp.lt.s32.totalorder %s338_s18, %s338_s18 }
  0x13   :  { %p345_p8 = por %p344_p7, %p343_p6 }
  0x15   :  { %p346_p9 = pnand %p345_p8, %p339_p5 }
  0x17   :  { %349 = shalt.err (!%p346_p9)
}
  0x18   :  { %33 = dma.hbm_to_vmem [thread:$0]  %s454_s1, 256, %s28_s17, [#allocation8], %s385_s12, %s385_s12, %s386_s13  }
  0x19   :  { %374 = dma.done.wait [#allocation5], 256  }
  0x1a   :  { %375 = vsyncadd [#allocation5], 4294967040 }
  0x1b   :  { %376 = dma.done.wait [#allocation8], 256  }
  0x1c   :  { %377 = vsyncadd [#allocation8], 4294967040  ;;  %v44_v0 = vlaneseq  ;;  %v388_v2 = vmov 0.0   ;;  %s421_s0 = smov 0  }
  0x1e   :  { %vm413_vm0 = vcmp.lt.s32.totalorder %v44_v0, 256 }
  0x1f   :  { %48 = vst.msk [vmem:[#allocation2] sm:$0x3] %vm413_vm0, %v388_v2  ;;  %49 = vst.msk [vmem:[#allocation3] sm:$0x3] %vm413_vm0, %v388_v2 }
  0x20 LB: > { %s285_s1 = sshll.u32 %s382_s0, 3  ;;  %vm68_vm1 = vcmask 1043456   ;;  %v389_v34 = vmov 1966171168   ;;  %v436_v43 = vshrl.u32 %v44_v0, 7  ;;  %s55_s0 = sadd.s32 1, %s382_s0   ;;  %s382_s0 = sphi %s421_s0, %s55_s0  }
  0x21   : > { %s58_s21 = scalar_lea.vmem [#allocation4], %s285_s1  ;;  %s61_s22 = scalar_lea.vmem [#allocation7], %s285_s1  ;;  %v150_v35 = vunpack.c.l.s4 %v389_v34 }
  0x22   : > { %v59_v3 = vld [vmem:[%s58_s21] sm:$0xff]  ;;  %p52_p10 = scmp.ge.s32.totalorder %s55_s0, 2  }
  0x23   : > { %v62_v4 = vld [vmem:[%s61_s22] sm:$0xff]  ;;  %v101_v6 = vmul.f32 %v59_v3, %v59_v3  ;;  %v151_v49 = vunpack.c.0.s8 %v150_v35  ;;  %vm206_vm2 = vcmask (%p52_p10), 1040384   ;;  %vm247_vm3 = vcmp.eq.s32.totalorder (%p52_p10), %v436_v43, 0  ;;  %s390_s24 = smov (%p52_p10), [#allocation9]  }
  0x24   : > { %v63_v5 = vsub.f32 %v59_v3, %v62_v4  ;;  %v119_v7 = vmul.f32 %v62_v4, %v62_v4  ;;  %v83_v8 = vmul.f32 %v62_v4, %v59_v3  ;;  %s263_s25 = sshll.u32 (%p52_p10), %s390_s24, 4  ;;  %s264_s25 = int_to_ptr.vmem [resolvable:$true] %s263_s25 }
  0x25   : > { %v103_v10 = vcombine.high %v101_v6, %v101_v6  ;;  %v105_v11 = vsel %vm68_vm1, %v101_v6, 0.0  ;;  %s350_s27 = scalar_lea.vmem (%p52_p10), %s264_s25, 128  ;;  %p355_p12 = scmp.lt.s32.totalorder (%p52_p10), %s264_s25, %s264_s25 }
  0x26   : > { %v64_v9 = vmul.f32 %v63_v5, %v63_v5  ;;  %v121_v12 = vcombine.high %v119_v7, %v119_v7  ;;  %v106_v13 = vrot.slane %v105_v11, 4  ;;  %v123_v14 = vsel %vm68_vm1, %v119_v7, 0.0  ;;  %p351_p11 = scmp.ne.s32.totalorder (%p52_p10), %s264_s25, %s350_s27  ;;  %p356_p13 = scmp.lt.s32.totalorder (%p52_p10), %s350_s27, %s350_s27 }
  0x27   : > { %v85_v15 = vcombine.high %v83_v8, %v83_v8  ;;  %v112_v18 = vsel %vm68_vm1, %v103_v10, 0.0  ;;  %v124_v19 = vrot.slane %v123_v14, 4  ;;  %v87_v27 = vsel %vm68_vm1, %v83_v8, 0.0 }
  0x28   : > { %v66_v16 = vcombine.high %v64_v9, %v64_v9  ;;  %v69_v17 = vsel %vm68_vm1, %v64_v9, 0.0  ;;  %v107_v21 = vadd.f32 %v106_v13, %v105_v11  ;;  %v113_v22 = vrot.slane %v112_v18, 4  ;;  %v145_v13 = vld [vmem:[#allocation2] sm:$0x3]  ;;  %p357_p0 = por (%p52_p10), %p356_p13, %p355_p12 }
  0x29   : > { %v70_v20 = vrot.slane %v69_v17, 4  ;;  %v130_v23 = vsel %vm68_vm1, %v121_v12, 0.0  ;;  %v125_v25 = vadd.f32 %v124_v19, %v123_v14  ;;  %v94_v36 = vsel %vm68_vm1, %v85_v15, 0.0 }
  0x2a   : > { %v76_v24 = vsel %vm68_vm1, %v66_v16, 0.0  ;;  %v131_v26 = vrot.slane %v130_v23, 4  ;;  %v108_v30 = vrot.slane %v107_v21, 2  ;;  %v114_v31 = vadd.f32 %v113_v22, %v112_v18  ;;  %p358_p1 = pnand (%p52_p10), %p357_p0, %p351_p11 }
  0x2b   : > { %v71_v28 = vadd.f32 %v70_v20, %v69_v17  ;;  %v77_v29 = vrot.slane %v76_v24, 4  ;;  %v126_v32 = vrot.slane %v125_v25, 2  ;;  %v88_v44 = vrot.slane %v87_v27, 4 }
  0x2c   : > { %v132_v33 = vadd.f32 %v131_v26, %v130_v23  ;;  %v109_v39 = vadd.f32 %v108_v30, %v107_v21  ;;  %v115_v40 = vrot.slane %v114_v31, 2  ;;  %v95_v50 = vrot.slane %v94_v36, 4 }
  0x2d   : > { %v72_v37 = vrot.slane %v71_v28, 2  ;;  %v78_v38 = vadd.f32 %v77_v29, %v76_v24  ;;  %v127_v41 = vadd.f32 %v126_v32, %v125_v25  ;;  %v89_v57 = vadd.f32 %v88_v44, %v87_v27 }
  0x2e   : > { %v133_v42 = vrot.slane %v132_v33, 2  ;;  %v110_v47 = vrot.slane %v109_v39, 1  ;;  %v116_v48 = vadd.f32 %v115_v40, %v114_v31  ;;  %v96_v63 = vadd.f32 %v95_v50, %v94_v36 }
  0x2f   : > { %v73_v45 = vadd.f32 %v72_v37, %v71_v28  ;;  %v79_v46 = vrot.slane %v78_v38, 2  ;;  %v128_v51 = vrot.slane %v127_v41, 1  ;;  %v154_v5 = vsub.s32 %v151_v49, %v436_v43  ;;  %v170_v28 = vld [vmem:[#allocation3] sm:$0x3] }
  0x30   : > { %v134_v52 = vadd.f32 %v133_v42, %v132_v33  ;;  %v111_v55 = vadd.f32 %v110_v47, %v109_v39  ;;  %v117_v56 = vrot.slane %v116_v48, 1  ;;  %v90_v6 = vrot.slane %v89_v57, 2 }
  0x31   : > { %v74_v53 = vrot.slane %v73_v45, 1  ;;  %v80_v54 = vadd.f32 %v79_v46, %v78_v38  ;;  %v129_v58 = vadd.f32 %v128_v51, %v127_v41  ;;  %v97_v10 = vrot.slane %v96_v63, 2 }
  0x32   : > { %v135_v59 = vrot.slane %v134_v52, 1  ;;  %v118_v62 = vadd.f32 %v117_v56, %v116_v48  ;;  %v91_v14 = vadd.f32 %v90_v6, %v89_v57  ;;  %v198_v32 = vsub.s32 (%p52_p10), 0, %v436_v43 }
  0x33   : > { %v75_v60 = vadd.f32 %v74_v53, %v73_v45  ;;  %v81_v61 = vrot.slane %v80_v54, 1  ;;  %v137_v3 = vmul.f32 %v129_v58, %v111_v55  ;;  %v98_v16 = vadd.f32 %v97_v10, %v96_v63 }
  0x34   : > { %v136_v2 = vadd.f32 %v135_v59, %v134_v52  ;;  %v92_v18 = vrot.slane %v91_v14, 1  ;;  %v202_v33 = vsub.s32 (%p52_p10), 1, %v436_v43  ;;  %v246_v59 = vand.u32 (%p52_p10), 127, %v44_v0 }
  0x35   : > { %v82_v4 = vadd.f32 %v81_v61, %v80_v54  ;;  %v139_v8 = vmax.f32 %v137_v3, 1e-16  ;;  %v99_v19 = vrot.slane %v98_v16, 1 }
  0x36   : > { %v138_v7 = vmul.f32 %v136_v2, %v118_v62  ;;  %v93_v20 = vadd.f32 %v92_v18, %v91_v14  ;;  %vm248_vm4 = vcmp.eq.s32.totalorder (%p52_p10), %v246_v59, 0  ;;  %vm252_vm5 = vcmp.eq.s32.totalorder (%p52_p10), %v246_v59, 1 }
  0x37   : > { %v148_v9 = vcombine.low %v75_v60, %v82_v4  ;;  %306 = vrsqrt.f32 %v139_v8  ;;  %v100_v21 = vadd.f32 %v99_v19, %v98_v16  ;;  %vm249_vm6 = vmand (%p52_p10), %vm247_vm3, %vm248_vm4 }
  0x38   : > { %v140_v11 = vmax.f32 %v138_v7, 1e-16  ;;  %vm253_vm7 = vmand (%p52_p10), %vm247_vm3, %vm252_vm5 }
  0x39   : > { %v155_v12 = vrot.slane %v148_v9, %v154_v5 }
  0x3a   : > { %308 = vrsqrt.f32 %v140_v11 }
  0x3b   : > { %v162_v15 = vrot.slane %v155_v12, %v154_v5 }
  0x3d   : > { %v164_v17 = vadd.f32 %v162_v15, %v145_v13 }
  0x3f   : > { %169 = vst.msk [vmem:[#allocation2] sm:$0x3] %vm413_vm0, %v164_v17 }
  0x44   : > { %v307_v22 = vpop.eup %306 }
  0x45   : > { %v143_v23 = vmul.f32 %v307_v22, %v93_v20 }
  0x46   :  { %v194_v31 = vld [vmem:[#allocation2] sm:$0x3] (%p52_p10) }
  0x47   : > { %v309_v24 = vpop.eup %308  ;;  %v199_v35 = vrot.slane (%p52_p10), %v194_v31, %v198_v32  ;;  %v203_v36 = vrot.slane (%p52_p10), %v194_v31, %v202_v33 }
  0x48   : > { %v144_v25 = vmul.f32 %v309_v24, %v100_v21 }
  0x49   :  { %v207_v39 = vsel (%p52_p10), %vm206_vm2, %v199_v35, 0.0  ;;  %v208_v40 = vsel (%p52_p10), %vm206_vm2, %v203_v36, 0.0 }
  0x4a   : > { %v173_v26 = vcombine.low %v143_v23, %v144_v25  ;;  %v209_v44 = vadd.f32 (%p52_p10), %v208_v40, %v207_v39 }
  0x4c   : > { %v180_v27 = vrot.slane %v173_v26, %v154_v5  ;;  %210 = vadd.xlane.f32.xlu0 (%p52_p10), %v209_v44 }
  0x4e   : > { %v187_v29 = vrot.slane %v180_v27, %v154_v5  ;;  %54 = sbr.rel (!%p52_p10) target bundleno = 32 (0x20), region = 53 }
  0x50   : > { %v189_v30 = vadd.f32 %v187_v29, %v170_v28 }
  0x52   : > { %190 = vst.msk [vmem:[#allocation3] sm:$0x3] %vm413_vm0, %v189_v30 }
  0x59   :  { %v219_v34 = vld [vmem:[#allocation3] sm:$0x3] }
  0x5a   :  { %v224_v37 = vrot.slane %v219_v34, %v198_v32  ;;  %v228_v38 = vrot.slane %v219_v34, %v202_v33 }
  0x5c   :  { %v231_v41 = vsel %vm206_vm2, %v224_v37, 0.0  ;;  %v232_v42 = vsel %vm206_vm2, %v228_v38, 0.0 }
  0x5d   :  { %v233_v45 = vadd.f32 %v232_v42, %v231_v41 }
  0x5f   :  { %234 = vadd.xlane.f32.xlu0 %v233_v45 }
  0xd5   :  { %v211_v46 = vpop.xlane.xlu0 %210 }
  0xd6   :  { %v212_v1 = vrot.slane %v211_v46, 4 }
  0xd8   :  { %v213_v47 = vadd.f32 %v212_v1, %v211_v46 }
  0xda   :  { %v214_v49 = vrot.slane %v213_v47, 2 }
  0xdc   :  { %v215_v52 = vadd.f32 %v214_v49, %v213_v47 }
  0xde   :  { %v216_v54 = vrot.slane %v215_v52, 1 }
  0xe0   :  { %v217_v56 = vadd.f32 %v216_v54, %v215_v52 }
  0xe2   :  { %287 = vpush %v217_v56 }
  0xe8   :  { %v235_v48 = vpop.xlane.xlu0 %234 }
  0xe9   :  { %v236_v50 = vrot.slane %v235_v48, 4 }
  0xeb   :  { %v237_v51 = vadd.f32 %v236_v50, %v235_v48 }
  0xed   :  { %v238_v53 = vrot.slane %v237_v51, 2 }
  0xef   :  { %v239_v55 = vadd.f32 %v238_v53, %v237_v51 }
  0xf1   :  { %v240_v57 = vrot.slane %v239_v55, 1 }
  0xf3   :  { %v241_v58 = vadd.f32 %v240_v57, %v239_v55 }
  0xf5   :  { %289 = vpush %v241_v58 }
 0x113   :  { %s288_s23 = spop %287 }
 0x114   :  { %v250_v60 = vstv %s288_s23 }
 0x115   :  { %v251_v61 = vsel %vm249_vm6, %v250_v60, 0.0 }
 0x126   :  { %s290_s26 = spop %289 }
 0x127   :  { %v254_v62 = vstv %s290_s26 }
 0x128   :  { %v255_v63 = vsel %vm253_vm7, %v254_v62, %v251_v61 }
 0x129   :  { %256 = vst [vmem:[#allocation9] sm:$0xff] %v255_v63 }
 0x12a   :  { %361 = shalt.err (!%p358_p1)
}
 0x12b   :  { %266 = dma.vmem_to_hbm [thread:$0]  %s264_s25, 128, %s455_s2, [#allocation6]  }
 0x12c   :  { %378 = dma.done.wait [#allocation6], 128  }
 0x12d   :  { %379 = vsyncadd [#allocation6], 4294967168 }
 0x12e   :  { %270 = vsyncpa [#allocation5], 1 }
 0x12f   :  { %271 = vsyncpa [#allocation8], 1 }
 0x130   :  { %272 = vsyncpa [#allocation6], 1 }

</bundles_post_ra>
